<compile_context>
chip_gen: v7x
topology: tpu7x:2x2x1
jax: 0.10.0
libtpu: 0.0.40
codegen_flags: <defaults>
</compile_context>

<pallas_src>
import jax
import jax.numpy as jnp
from jax.experimental import pallas as pl
from jax.experimental.pallas import tpu as pltpu


def _round_up(x, m):
    return (x + m - 1) // m * m


def anfis_kernel(xt_ref, means_ref, negc_ref, pqr_t_ref, out_ref, w_ref):
    xt = xt_ref[...]                    # (2, TN)   batch on lanes
    m = means_ref[...]                  # (R8, 2)   rules on sublanes
    c = negc_ref[...]                   # (R8, 2)   == -1 / (2 * sigma^2)
    pqr_t = pqr_t_ref[...]              # (8, R8)   rows = [p0,p1,q0,q1,r0,r1,1,0]

    x0 = xt[0:1, :]                     # (1, TN)
    x1 = xt[1:2, :]                     # (1, TN)

    # Fused Gaussian product: exp(-(d0^2/(2 s0^2) + d1^2/(2 s1^2))) -- ONE exp.
    # Padded rules have mean=1e18, c=-1.0 -> expo ~ -2e36 -> exp == 0 exactly,
    # so no explicit mask is needed.
    d0 = x0 - m[:, 0:1]                 # (R8, TN)
    d1 = x1 - m[:, 1:2]                 # (R8, TN)
    expo = d0 * d0 * c[:, 0:1] + d1 * d1 * c[:, 1:2]
    firing = jnp.exp(expo)              # (R8, TN)

    # One packed matmul gives all rule-sums, including the normalization
    # denominator (ones row):  y[k, n] = sum_j pqr_t[k, j] * firing[j, n].
    y = jnp.dot(pqr_t, firing, preferred_element_type=jnp.float32)   # (8, TN)
    denom = y[6:7, :]                                                  # (1, TN)
    inv = pl.reciprocal(jnp.maximum(denom, 1e-30), approx=False)      # (1, TN)

    out0 = (x0 * y[0:1, :] + x1 * y[2:3, :] + y[4:5, :]) * inv        # (1, TN)
    out1 = (x0 * y[1:2, :] + x1 * y[3:4, :] + y[5:6, :]) * inv        # (1, TN)

    out_ref[...] = jnp.concatenate([out0, out1], axis=0)              # (2, TN)
    w_ref[...] = firing * inv                                         # (R8, TN)


def anfis_forward(X, means, sigmas, p, q, r, *, tile_n=65536):
    """Pallas ANFIS forward. X: (N, 2); params: (R, 2).

    Returns (output (N, 2), weights (N, R)), both float32.
    """
    N, F = X.shape
    assert F == 2
    R = means.shape[0]
    R8 = _round_up(max(R, 1), 8)        # rules padded to sublane granularity

    # --- Batch tile sizing --------------------------------------------------
    n_pad128 = _round_up(max(N, 1), 128)
    TN = min(int(tile_n), n_pad128)
    # Keep >= ~4 grid steps for large batches (megacore + double-buffering).
    TN = min(TN, max(128, _round_up((n_pad128 + 3) // 4, 128)))
    # VMEM budget: double-buffered in/out blocks + ~6 block-sized temporaries,
    # kept well under the 48 MiB scoped limit (v7x-safe).
    bytes_per_elem = 2 * (2 + 2 + R8) * 4 + 6 * R8 * 4
    max_tn = max(128, ((40 << 20) // bytes_per_elem) // 128 * 128)
    TN = max(128, (min(TN, max_tn) // 128) * 128)
    N_pad = _round_up(n_pad128, TN)

    # --- Inputs in transposed layout (batch on lanes) ------------------------
    X = X.astype(jnp.float32)
    Xt = jnp.zeros((2, N_pad), jnp.float32).at[:, :N].set(X.T)

    BIG = 1e18                          # poisoned padding: exp -> exactly 0
    means_p = jnp.full((R8, 2), BIG, jnp.float32).at[:R].set(
        means.astype(jnp.float32))
    negc_p = jnp.full((R8, 2), -1.0, jnp.float32).at[:R].set(
        -1.0 / (2.0 * sigmas.astype(jnp.float32) ** 2))
    pqr_t = (jnp.zeros((8, R8), jnp.float32)
             .at[0:2, :R].set(p.astype(jnp.float32).T)
             .at[2:4, :R].set(q.astype(jnp.float32).T)
             .at[4:6, :R].set(r.astype(jnp.float32).T)
             .at[6, :R].set(1.0))

    grid = (N_pad // TN,)

    out_t, w_t = pl.pallas_call(
        anfis_kernel,
        out_shape=(
            jax.ShapeDtypeStruct((2, N_pad), jnp.float32),
            jax.ShapeDtypeStruct((R8, N_pad), jnp.float32),
        ),
        grid=grid,
        in_specs=[
            pl.BlockSpec((2, TN), lambda i: (0, i)),       # X^T tile
            pl.BlockSpec((R8, 2), lambda i: (0, 0)),       # means (resident)
            pl.BlockSpec((R8, 2), lambda i: (0, 0)),       # -1/(2 sigma^2)
            pl.BlockSpec((8, R8), lambda i: (0, 0)),       # packed [p|q|r|1]^T
        ],
        out_specs=(
            pl.BlockSpec((2, TN), lambda i: (0, i)),       # output^T tile
            pl.BlockSpec((R8, TN), lambda i: (0, i)),      # weights^T tile
        ),
        compiler_params=pltpu.CompilerParams(
            dimension_semantics=("parallel",),
            vmem_limit_bytes=48 << 20,
        ),
    )(Xt, means_p, negc_p, pqr_t)

    # The transpose/slice back to the PyTorch layout touches only (2+R8)*N_pad
    # floats (vs. 128*N_pad in the lane-padded layout), so it is cheap.
    return out_t[:, :N].T, w_t[:R, :N].T


def anfis_reference(X, means, sigmas, p, q, r):
    """Pure-JAX transliteration of the PyTorch forward for verification."""
    R = means.shape[0]
    mu = jnp.stack(
        [jnp.exp(-((X[:, i:i + 1] - means[:, i]) ** 2) / (2.0 * sigmas[:, i] ** 2))
         for i in range(2)],
        axis=1)                                            # (N, 2, R)
    firing = jnp.prod(mu, axis=1)                          # (N, R)
    w = firing / jnp.sum(firing, axis=1, keepdims=True)    # (N, R)
    f = jnp.stack(
        [p[j] * X[:, 0:1] + q[j] * X[:, 1:2] + r[j] for j in range(R)],
        axis=1)                                            # (N, R, 2)
    out = jnp.sum(w[:, :, None] * f, axis=1)               # (N, 2)
    return out, w


if __name__ == "__main__":
    num_rules = 3
    N = 8  # batch of samples, each with 2 features

    key = jax.random.PRNGKey(0)
    kx, km, ks, kp, kq, kr = jax.random.split(key, 6)

    X = jax.random.uniform(kx, (N, 2), dtype=jnp.float32)
    means = jax.random.uniform(km, (num_rules, 2), dtype=jnp.float32)
    sigmas = jax.random.uniform(ks, (num_rules, 2), dtype=jnp.float32)
    p = jax.random.uniform(kp, (num_rules, 2), dtype=jnp.float32)
    q = jax.random.uniform(kq, (num_rules, 2), dtype=jnp.float32)
    r = jax.random.uniform(kr, (num_rules, 2), dtype=jnp.float32)

    out, w = anfis_forward(X, means, sigmas, p, q, r)
    jax.block_until_ready((out, w))

    out_ref, w_ref = anfis_reference(X, means, sigmas, p, q, r)
    assert out.shape == (N, 2) and w.shape == (N, num_rules)
    assert jnp.allclose(out, out_ref, rtol=1e-5, atol=1e-5)
    assert jnp.allclose(w, w_ref, rtol=1e-5, atol=1e-5)

    # Second check: exercise a multi-step pipelined grid (several batch tiles).
    N2 = 600
    X2 = jax.random.uniform(jax.random.PRNGKey(1), (N2, 2), dtype=jnp.float32)
    out2, w2 = anfis_forward(X2, means, sigmas, p, q, r, tile_n=128)
    jax.block_until_ready((out2, w2))
    out2_ref, w2_ref = anfis_reference(X2, means, sigmas, p, q, r)
    assert jnp.allclose(out2, out2_ref, rtol=1e-5, atol=1e-5)
    assert jnp.allclose(w2, w2_ref, rtol=1e-5, atol=1e-5)

    print("KERNEL_OK")
</pallas_src>

<mosaic_0001>
module attributes {stable_mosaic.version = 11 : i64} {
  func.func @anfis_kernel(%arg0: i32, %arg1: memref<2x128xf32, #tpu.memory_space<vmem>>, %arg2: memref<8x2xf32, #tpu.memory_space<vmem>>, %arg3: memref<8x2xf32, #tpu.memory_space<vmem>>, %arg4: memref<8x8xf32, #tpu.memory_space<vmem>>, %arg5: memref<2x128xf32, #tpu.memory_space<vmem>>, %arg6: memref<8x128xf32, #tpu.memory_space<vmem>>) attributes {dimension_semantics = [#tpu.dimension_semantics<parallel>], iteration_bounds = array<i64: 1>, scalar_prefetch = 0 : i64, scratch_operands = 0 : i64, tpu.core_type = #tpu.core_type<tc>, window_params = [{transform_indices = @transform_0, window_bounds = array<i64: 2, 128>}, {pipeline_mode = #tpu.pipeline_mode<synchronous>, transform_indices = @transform_1, window_bounds = array<i64: 8, 2>}, {pipeline_mode = #tpu.pipeline_mode<synchronous>, transform_indices = @transform_2, window_bounds = array<i64: 8, 2>}, {pipeline_mode = #tpu.pipeline_mode<synchronous>, transform_indices = @transform_3, window_bounds = array<i64: 8, 8>}, {transform_indices = @transform_4, window_bounds = array<i64: 2, 128>}, {transform_indices = @transform_5, window_bounds = array<i64: 8, 128>}]} {
    %c0 = arith.constant 0 : index
    %c0_0 = arith.constant 0 : index
    %0 = vector.load %arg1[%c0, %c0_0] : memref<2x128xf32, #tpu.memory_space<vmem>>, vector<2x128xf32>
    %c0_1 = arith.constant 0 : index
    %c0_2 = arith.constant 0 : index
    %1 = vector.load %arg2[%c0_1, %c0_2] : memref<8x2xf32, #tpu.memory_space<vmem>>, vector<8x2xf32>
    %c0_3 = arith.constant 0 : index
    %c0_4 = arith.constant 0 : index
    %2 = vector.load %arg3[%c0_3, %c0_4] : memref<8x2xf32, #tpu.memory_space<vmem>>, vector<8x2xf32>
    %c0_5 = arith.constant 0 : index
    %c0_6 = arith.constant 0 : index
    %3 = vector.load %arg4[%c0_5, %c0_6] : memref<8x8xf32, #tpu.memory_space<vmem>>, vector<8x8xf32>
    %4 = vector.extract_strided_slice %0 {offsets = [0, 0], sizes = [1, 128], strides = [1, 1]} : vector<2x128xf32> to vector<1x128xf32>
    %5 = vector.extract_strided_slice %0 {offsets = [1, 0], sizes = [1, 128], strides = [1, 1]} : vector<2x128xf32> to vector<1x128xf32>
    %6 = vector.extract_strided_slice %1 {offsets = [0, 0], sizes = [8, 1], strides = [1, 1]} : vector<8x2xf32> to vector<8x1xf32>
    %7 = vector.broadcast %4 : vector<1x128xf32> to vector<8x128xf32>
    %8 = vector.broadcast %6 : vector<8x1xf32> to vector<8x128xf32>
    %9 = arith.subf %7, %8 : vector<8x128xf32>
    %10 = vector.extract_strided_slice %1 {offsets = [0, 1], sizes = [8, 1], strides = [1, 1]} : vector<8x2xf32> to vector<8x1xf32>
    %11 = vector.broadcast %5 : vector<1x128xf32> to vector<8x128xf32>
    %12 = vector.broadcast %10 : vector<8x1xf32> to vector<8x128xf32>
    %13 = arith.subf %11, %12 : vector<8x128xf32>
    %14 = arith.mulf %9, %9 : vector<8x128xf32>
    %15 = vector.extract_strided_slice %2 {offsets = [0, 0], sizes = [8, 1], strides = [1, 1]} : vector<8x2xf32> to vector<8x1xf32>
    %16 = vector.broadcast %15 : vector<8x1xf32> to vector<8x128xf32>
    %17 = arith.mulf %14, %16 : vector<8x128xf32>
    %18 = arith.mulf %13, %13 : vector<8x128xf32>
    %19 = vector.extract_strided_slice %2 {offsets = [0, 1], sizes = [8, 1], strides = [1, 1]} : vector<8x2xf32> to vector<8x1xf32>
    %20 = vector.broadcast %19 : vector<8x1xf32> to vector<8x128xf32>
    %21 = arith.mulf %18, %20 : vector<8x128xf32>
    %22 = arith.addf %17, %21 : vector<8x128xf32>
    %23 = math.exp %22 : vector<8x128xf32>
    %cst = arith.constant dense<0.000000e+00> : vector<8x128xf32>
    %24 = tpu.matmul %3, %23, %cst {dimension_numbers = #tpu.dot_dimension_numbers<[1], [0], [0], [1], [0, 0, 1, 1], [], []>} : vector<8x8xf32>, vector<8x128xf32>, vector<8x128xf32> -> vector<8x128xf32>
    %25 = vector.extract_strided_slice %24 {offsets = [6, 0], sizes = [1, 128], strides = [1, 1]} : vector<8x128xf32> to vector<1x128xf32>
    %cst_7 = arith.constant 1.000000e-30 : f32
    %26 = vector.broadcast %cst_7 : f32 to vector<1x128xf32>
    %27 = arith.maximumf %25, %26 : vector<1x128xf32>
    %28 = tpu.reciprocal %27 : vector<1x128xf32> -> vector<1x128xf32>
    %29 = vector.extract_strided_slice %24 {offsets = [0, 0], sizes = [1, 128], strides = [1, 1]} : vector<8x128xf32> to vector<1x128xf32>
    %30 = arith.mulf %4, %29 : vector<1x128xf32>
    %31 = vector.extract_strided_slice %24 {offsets = [2, 0], sizes = [1, 128], strides = [1, 1]} : vector<8x128xf32> to vector<1x128xf32>
    %32 = arith.mulf %5, %31 : vector<1x128xf32>
    %33 = arith.addf %30, %32 : vector<1x128xf32>
    %34 = vector.extract_strided_slice %24 {offsets = [4, 0], sizes = [1, 128], strides = [1, 1]} : vector<8x128xf32> to vector<1x128xf32>
    %35 = arith.addf %33, %34 : vector<1x128xf32>
    %36 = arith.mulf %35, %28 : vector<1x128xf32>
    %37 = vector.extract_strided_slice %24 {offsets = [1, 0], sizes = [1, 128], strides = [1, 1]} : vector<8x128xf32> to vector<1x128xf32>
    %38 = arith.mulf %4, %37 : vector<1x128xf32>
    %39 = vector.extract_strided_slice %24 {offsets = [3, 0], sizes = [1, 128], strides = [1, 1]} : vector<8x128xf32> to vector<1x128xf32>
    %40 = arith.mulf %5, %39 : vector<1x128xf32>
    %41 = arith.addf %38, %40 : vector<1x128xf32>
    %42 = vector.extract_strided_slice %24 {offsets = [5, 0], sizes = [1, 128], strides = [1, 1]} : vector<8x128xf32> to vector<1x128xf32>
    %43 = arith.addf %41, %42 : vector<1x128xf32>
    %44 = arith.mulf %43, %28 : vector<1x128xf32>
    %45 = tpu.concatenate %36, %44 in 0 : vector<1x128xf32>, vector<1x128xf32> -> vector<2x128xf32>
    %c0_8 = arith.constant 0 : index
    %c0_9 = arith.constant 0 : index
    %46 = vector.load %arg5[%c0_8, %c0_9] : memref<2x128xf32, #tpu.memory_space<vmem>>, vector<2x128xf32>
    tpu.vector_store %arg5[%c0_8, %c0_9], %45 {strides = array<i32>} : memref<2x128xf32, #tpu.memory_space<vmem>>, vector<2x128xf32>,
    %47 = vector.broadcast %28 : vector<1x128xf32> to vector<8x128xf32>
    %48 = arith.mulf %23, %47 : vector<8x128xf32>
    %c0_10 = arith.constant 0 : index
    %c0_11 = arith.constant 0 : index
    %49 = vector.load %arg6[%c0_10, %c0_11] : memref<8x128xf32, #tpu.memory_space<vmem>>, vector<8x128xf32>
    tpu.vector_store %arg6[%c0_10, %c0_11], %48 {strides = array<i32>} : memref<8x128xf32, #tpu.memory_space<vmem>>, vector<8x128xf32>,
    return
  }
  func.func @transform_0(%arg0: i32) -> (i32, i32) {
    %c0_i32 = arith.constant 0 : i32
    %c0_i32_0 = arith.constant 0 : i32
    return %c0_i32, %arg0 : i32, i32
  }
  func.func @transform_1(%arg0: i32) -> (i32, i32) {
    %c0_i32 = arith.constant 0 : i32
    %c0_i32_0 = arith.constant 0 : i32
    %c0_i32_1 = arith.constant 0 : i32
    return %c0_i32, %c0_i32_0 : i32, i32
  }
  func.func @transform_2(%arg0: i32) -> (i32, i32) {
    %c0_i32 = arith.constant 0 : i32
    %c0_i32_0 = arith.constant 0 : i32
    %c0_i32_1 = arith.constant 0 : i32
    return %c0_i32, %c0_i32_0 : i32, i32
  }
  func.func @transform_3(%arg0: i32) -> (i32, i32) {
    %c0_i32 = arith.constant 0 : i32
    %c0_i32_0 = arith.constant 0 : i32
    %c0_i32_1 = arith.constant 0 : i32
    return %c0_i32, %c0_i32_0 : i32, i32
  }
  func.func @transform_4(%arg0: i32) -> (i32, i32) {
    %c0_i32 = arith.constant 0 : i32
    %c0_i32_0 = arith.constant 0 : i32
    return %c0_i32, %arg0 : i32, i32
  }
  func.func @transform_5(%arg0: i32) -> (i32, i32) {
    %c0_i32 = arith.constant 0 : i32
    %c0_i32_0 = arith.constant 0 : i32
    return %c0_i32, %arg0 : i32, i32
  }
}

</mosaic_0001>

<bundles_post_ra>
// kernel: tpu_custom_call.1
= control target key start
LH: loop header
LB: loop body
LE: loop exit
PB: predicated region body
PF: predicated region fallthrough
CT: control target
= control target key end

     0   :  { %11 = vsyncpa [#allocation3], 0  ;;  %v273_v2 = vmov 0   ;;  %s353_s0 = inlined_call_operand.vmem [shape: f32[2,128], index: 0, kind: input, shape index: {}]   ;;  %s354_s1 = inlined_call_operand.vmem [shape: f32[8,2], index: 1, kind: input, shape index: {}]   ;;  %s355_s2 = inlined_call_operand.vmem [shape: f32[8,2], index: 2, kind: input, shape index: {}]   ;;  %s356_s3 = inlined_call_operand.vmem [shape: f32[8,8], index: 3, kind: input, shape index: {}]   ;;  %s357_s4 = inlined_call_operand.hbm [shape: f32[2,128], index: 4, kind: output, shape index: {0}]   ;;  %s358_s5 = inlined_call_operand.hbm [shape: f32[8,128], index: 5, kind: output, shape index: {1}]  }
   0x1   :  { %v22_v0 = vld [vmem:[%s354_s1] sm:$0xff]  ;;  %217 = vset.pattern.permute.xlu0 %v273_v2  ;;  %219 = vset.pattern.permute.xlu1 %v273_v2 }
   0x2   :  { %v23_v1 = vld [vmem:[%s355_s2] sm:$0xff] }
   0x3   :  { %12 = vsyncpa [#allocation5], 0  ;;  %31 = vperm.xlu0 %217, %v22_v0   ;;  %47 = vperm.xlu1 %219, %v23_v1   ;;  %v274_v3 = vmov 1   ;;  %v275_v4 = vmov 0.0   ;;  %vm276_vm0 = vmmov 0   ;;  %v25_v5 = vlaneseq  ;;  %v24_v24 = vld [vmem:[%s356_s3] sm:$0xff] }
   0x4   :  { %206 = vmatprep.subr.mxu0 %v275_v4  ;;  %208 = vmatprep.mubr.msk.f32.mxu0 %vm276_vm0, %v275_v4  ;;  %v21_v8 = vld [vmem:[%s353_s0] sm:$0x3]  ;;  %vm60_vm1 = vcmask 64512   ;;  %s277_s0 = smov [#allocation4]   ;;  %s278_s24 = smov [#allocation2]   ;;  %vm166_vm2 = vcmask 1040384  }
   0x5   :  { %v26_v6 = vshrl.u32 %v25_v5, 7  ;;  %s191_s3 = sshll.u32 %s277_s0, 4  ;;  %s181_s25 = sshll.u32 %s278_s24, 4  ;;  %s192_s3 = int_to_ptr.vmem [resolvable:$true] %s191_s3  ;;  %s321_s25 = int_to_ptr.vmem [resolvable:$true] %s181_s25 }
   0x6   :  { %s225_s26 = scalar_lea.vmem %s192_s3, 128  ;;  %p230_p1 = scmp.lt.s32.totalorder %s192_s3, %s192_s3 }
   0x7   :  { %218 = vset.pattern.permute.xlu0 %v274_v3  ;;  %220 = vset.pattern.permute.xlu1 %v274_v3  ;;  %v27_v7 = vsub.s32 0, %v26_v6  ;;  %v37_v10 = vsub.s32 1, %v26_v6  ;;  %v171_v37 = vsub.s32 6, %v26_v6  ;;  %p226_p0 = scmp.ne.s32.totalorder %s192_s3, %s225_s26  ;;  %p231_p2 = scmp.lt.s32.totalorder %s225_s26, %s225_s26 }
   0x8   :  { %40 = vperm.xlu0 %218, %v22_v0   ;;  %53 = vperm.xlu1 %220, %v23_v1  }
   0x9   :  { %v28_v9 = vrot.slane %v21_v8, %v27_v7  ;;  %v38_v14 = vrot.slane %v21_v8, %v37_v10  ;;  %p232_p3 = por %p231_p2, %p230_p1 }
   0xb   :  { %p233_p4 = pnand %p232_p3, %p226_p0 }
  0x82   :  { %v32_v11 = vpop.permute.xlu0 %31  ;;  %v48_v12 = vpop.permute.xlu1 %47 }
  0x83   :  { %v34_v13 = vsub.f32 %v28_v9, %v32_v11 }
  0x85   :  { %v44_v16 = vmul.f32 %v34_v13, %v34_v13 }
  0x87   :  { %v41_v15 = vpop.permute.xlu0 %40  ;;  %v54_v18 = vpop.permute.xlu1 %53  ;;  %v50_v20 = vmul.f32 %v48_v12, %v44_v16 }
  0x88   :  { %v43_v17 = vsub.f32 %v38_v14, %v41_v15 }
  0x8a   :  { %v51_v19 = vmul.f32 %v43_v17, %v43_v17 }
  0x8c   :  { %v56_v21 = vmul.f32 %v54_v18, %v51_v19 }
  0x8e   :  { %v57_v22 = vadd.f32 %v56_v21, %v50_v20 }
  0x90   :  { %v58_v23 = vmul.f32 1.442695, %v57_v22 }
  0x92   :  { %221 = vpow2.f32 %v58_v23 }
  0x9c   :  { %v222_v25 = vpop.eup %221 }
  0x9d   :  { %207 = vmatpush3.msra.mxu0 %v222_v25 }
  0x9e   :  { %209 = vmatmul.mubr.msk.f32.vlgmr.msra.gmra.mrb[0].mxu0 %vm60_vm1, %v24_v24 }
 0x171   :  { %v130_v26 = vpop.f32.mrb[0].mxu0 }
 0x172   :  { %v134_v27 = vmax.f32 %v130_v26, 1e-30  ;;  %v138_v28 = vrot.slane %v130_v26, 1  ;;  %v152_v29 = vrot.slane %v130_v26, 2  ;;  %v210_v30 = vpop.f32.mrb[1].mxu0  ;;  %v136_v35 = vmul.f32 %v130_v26, %v21_v8 }
 0x173   :  { %v159_v39 = vrot.slane %v130_v26, 5  ;;  %v145_v41 = vrot.slane %v130_v26, 4 }
 0x174   :  { %223 = vrcp.f32 %v134_v27  ;;  %v154_v31 = vmul.f32 %v152_v29, %v21_v8  ;;  %v140_v32 = vmul.f32 %v138_v28, %v21_v8 }
 0x176   :  { %v156_v33 = vrot.slane %v154_v31, 1  ;;  %v142_v34 = vrot.slane %v140_v32, 1 }
 0x178   :  { %v158_v36 = vadd.f32 %v156_v33, %v140_v32  ;;  %v144_v38 = vadd.f32 %v142_v34, %v136_v35 }
 0x17a   :  { %v161_v43 = vadd.f32 %v159_v39, %v158_v36  ;;  %v147_v45 = vadd.f32 %v145_v41, %v144_v38 }
 0x17e   :  { %v224_v40 = vpop.eup %223 }
 0x17f   :  { %v149_v42 = vrot.slane %v224_v40, 6  ;;  %v172_v44 = vrot.slane %v224_v40, %v171_v37 }
 0x181   :  { %v162_v46 = vmul.f32 %v161_v43, %v149_v42  ;;  %v173_v47 = vmul.f32 %v222_v25, %v172_v44  ;;  %v151_v48 = vmul.f32 %v149_v42, %v147_v45 }
 0x183   :  { %v164_v49 = vrot.slane %v162_v46, 7  ;;  %174 = vst [vmem:[#allocation4] sm:$0xff] %v173_v47 }
 0x184   :  { %236 = shalt.err (!%p233_p4)
}
 0x185   :  { %s237_s29 = scalar_lea.hbm %s358_s5, 128 }
 0x186   :  { %p238_p5 = scmp.ne.s32.totalorder %s358_s5, %s237_s29  ;;  %p241_p6 = scmp.lt.u32.totalorder %s237_s29, %s358_s5 }
 0x188   :  { %p243_p7 = pnand %p241_p6, %p238_p5 }
 0x18a   :  { %246 = shalt.err (!%p243_p7)
}
 0x18b   :  { %194 = dma.vmem_to_hbm [thread:$0]  %s192_s3, 128, %s358_s5, [#allocation5]   ;;  %v167_v50 = vsel %vm166_vm2, %v151_v48, %v164_v49 }
 0x18c   :  { %168 = vst [vmem:[#allocation2] sm:$0x3] %v167_v50  ;;  %s247_s11 = scalar_lea.vmem %s321_s25, 32  ;;  %p252_p9 = scmp.lt.s32.totalorder %s321_s25, %s321_s25 }
 0x18d   :  { %p248_p8 = scmp.ne.s32.totalorder %s321_s25, %s247_s11  ;;  %p253_p10 = scmp.lt.s32.totalorder %s247_s11, %s247_s11 }
 0x18f   :  { %p254_p11 = por %p253_p10, %p252_p9 }
 0x191   :  { %p255_p12 = pnand %p254_p11, %p248_p8 }
 0x193   :  { %258 = shalt.err (!%p255_p12)
}
 0x194   :  { %s259_s14 = scalar_lea.hbm %s357_s4, 32 }
 0x195   :  { %p260_p13 = scmp.ne.s32.totalorder %s357_s4, %s259_s14  ;;  %p263_p0 = scmp.lt.u32.totalorder %s259_s14, %s357_s4 }
 0x197   :  { %p265_p1 = pnand %p263_p0, %p260_p13 }
 0x199   :  { %268 = shalt.err (!%p265_p1)
}
 0x19a   :  { %184 = dma.vmem_to_hbm [thread:$0]  %s321_s25, 32, %s357_s4, [#allocation3]  }
 0x19b   :  { %269 = dma.done.wait [#allocation3], 32  }
 0x19c   :  { %270 = vsyncadd [#allocation3], 4294967264 }
 0x19d   :  { %271 = dma.done.wait [#allocation5], 128  }
 0x19e   :  { %272 = vsyncadd [#allocation5], 4294967168 }
 0x19f   :  { %201 = vsyncpa [#allocation3], 1 }
 0x1a0   :  { %202 = vsyncpa [#allocation5], 1 }

</bundles_post_ra>
